<compile_context>
chip_gen: v7x
topology: tpu7x:2x2x1
jax: 0.10.0
libtpu: 0.0.40
codegen_flags: <defaults>
</compile_context>

<pallas_src>
import jax
import jax.numpy as jnp
from jax import lax
from jax.experimental import pallas as pl
from jax.experimental.pallas import tpu as pltpu

HIDDEN = 128                     # nn.Linear(input_dim, 128)
BALL_EPS_F32 = 4e-3              # geoopt BALL_EPS[torch.float32]
MIN_NORM = 1e-15                 # geoopt MIN_NORM
MAXNORM = 1.0 - BALL_EPS_F32     # (1 - eps) / sqrt(c), c = 1.0 -> compile-time const
TILE_B_DEFAULT = 1024            # primary knob (multiple of 8 sublanes)

_VMEM_FALLBACK = 64 * 1024 * 1024   # assume the smallest (v7x) VMEM if query fails
_VMEM_FRACTION = 0.75               # budget fraction of per-core VMEM for tiles
_HEADROOM_BYTES = 4 << 20


# --------------------------------------------------------------------------- #
# Kernel
# --------------------------------------------------------------------------- #
def poincare_classifier_kernel(x_ref, w1_ref, b1_ref, w2_ref, b2_ref, o_ref):
    # x_ref : (TB, D_in)      f32  (batch tile)
    # w1_ref: (D_in, 128)     f32  (transposed, VMEM-resident)
    # b1_ref: (1, 128)        f32  (resident)
    # w2_ref: (128, D_out)    f32  (transposed, resident)
    # b2_ref: (1, D_out)      f32  (resident)
    # o_ref : (TB, D_out)     f32
    x = x_ref[...]

    # hidden = ReLU(x @ W1 + b1)              (MXU + VPU)
    h = jnp.dot(x, w1_ref[...], preferred_element_type=jnp.float32) + b1_ref[...]
    h = jnp.maximum(h, 0.0)

    # logits = h @ W2 + b2                    (MXU)
    y = jnp.dot(h, w2_ref[...], preferred_element_type=jnp.float32) + b2_ref[...]

    # Poincare ball projection, c = 1.0:
    #   norm > maxnorm -> y / norm * maxnorm, else y (exact identity branch).
    sumsq = jnp.sum(y * y, axis=-1, keepdims=True)
    inv_norm = lax.rsqrt(jnp.maximum(sumsq, MIN_NORM * MIN_NORM))   # EUP rsqrt
    scale = jnp.where(sumsq > MAXNORM * MAXNORM, MAXNORM * inv_norm, 1.0)
    o_ref[...] = y * scale


# --------------------------------------------------------------------------- #
# Wrapper helpers
# --------------------------------------------------------------------------- #
def _vmem_capacity_bytes():
    try:
        info = pltpu.get_tpu_info()
        cap = getattr(info, "vmem_capacity_bytes", None)
        if cap:
            return int(cap)
    except Exception:
        pass
    return _VMEM_FALLBACK


def _weight_bytes(d_in, d_out, single_buffer_weights):
    nbuf = 1 if single_buffer_weights else 2
    return nbuf * 4 * (d_in * HIDDEN + HIDDEN + HIDDEN * d_out + d_out)


def _pick_tile_b(B, d_in, d_out, tile_b, single_buffer_weights):
    """Generation-aware batch tile: multiple of 8, fits VMEM, >=2 grid steps."""
    if B < 8:
        return B                       # block == full batch dim (allowed)

    # Per-row VMEM bytes: double-buffered x + out tiles, plus live h / y values.
    per_row = 4 * (2 * d_in + 2 * d_out + HIDDEN + d_out)
    budget = (int(_VMEM_FRACTION * _vmem_capacity_bytes())
              - _weight_bytes(d_in, d_out, single_buffer_weights)
              - _HEADROOM_BYTES)
    tb_cap = max(8, (budget // max(per_row, 1)) // 8 * 8)

    tb = min(int(tile_b), (B // 8) * 8, tb_cap)
    if B >= 16:
        # Ensure >= 2 grid steps so v7x dual TensorCores both engage; the extra
        # ~0.35us grid step is negligible on single-TC v5e/v6e.
        half = ((pl.cdiv(B, 2) + 7) // 8) * 8
        tb = min(tb, half)
    return max(tb, 8)


def _vmem_limit_bytes(tb, d_in, d_out, single_buffer_weights):
    need = (2 * tb * (d_in + d_out) * 4                           # x / out tiles (x2)
            + _weight_bytes(d_in, d_out, single_buffer_weights)   # resident weights
            + tb * (HIDDEN + d_out) * 4                           # h, y live values
            + _HEADROOM_BYTES)
    cap = _vmem_capacity_bytes()
    return int(min(max(need, 32 << 20), int(0.9 * cap)))


def _forward(x, w1_t, b1_2d, w2_t, b2_2d, *, tb, single_buffer_weights):
    B, d_in = x.shape
    d_out = w2_t.shape[1]
    grid = (pl.cdiv(B, tb),)          # partial last block handled by Pallas

    def resident(shape):
        if single_buffer_weights:
            # Constant index_map -> block never changes; 1 buffer is enough.
            return pl.BlockSpec(shape, lambda i: (0, 0),
                                pipeline_mode=pl.Buffered(1))
        return pl.BlockSpec(shape, lambda i: (0, 0))

    return pl.pallas_call(
        poincare_classifier_kernel,
        out_shape=jax.ShapeDtypeStruct((B, d_out), jnp.float32),
        grid=grid,
        in_specs=[
            pl.BlockSpec((tb, d_in), lambda i: (i, 0)),   # x tile (double-buffered)
            resident((d_in, HIDDEN)),                     # W1
            resident((1, HIDDEN)),                        # b1
            resident((HIDDEN, d_out)),                    # W2
            resident((1, d_out)),                         # b2
        ],
        out_specs=pl.BlockSpec((tb, d_out), lambda i: (i, 0)),
        compiler_params=pltpu.CompilerParams(
            dimension_semantics=("parallel",),            # batch axis -> dual-TC on v7x
            vmem_limit_bytes=_vmem_limit_bytes(tb, d_in, d_out,
                                               single_buffer_weights),
        ),
    )(x, w1_t, b1_2d, w2_t, b2_2d)


def poincare_classifier(x, w1, b1, w2, b2, *, tile_b=TILE_B_DEFAULT):
    """x: (B, D_in); w1: (128, D_in); b1: (128,); w2: (D_out, 128); b2: (D_out,)."""
    x = jnp.asarray(x, jnp.float32)
    B, _ = x.shape
    d_in = x.shape[1]
    d_out = int(w2.shape[0])

    # Plain-JAX glue: transpose weights once (no output-lane padding anymore).
    w1_t = jnp.asarray(w1, jnp.float32).T                       # (D_in, 128)
    b1_2d = jnp.asarray(b1, jnp.float32).reshape(1, HIDDEN)     # (1, 128)
    w2_t = jnp.asarray(w2, jnp.float32).T                       # (128, D_out)
    b2_2d = jnp.asarray(b2, jnp.float32).reshape(1, d_out)      # (1, D_out)

    want_single = hasattr(pl, "Buffered")
    tb = _pick_tile_b(B, d_in, d_out, tile_b, want_single)
    try:
        return _forward(x, w1_t, b1_2d, w2_t, b2_2d,
                        tb=tb, single_buffer_weights=want_single)
    except Exception:
        if not want_single:
            raise
        # Fallback: default double-buffered resident weights.
        tb = _pick_tile_b(B, d_in, d_out, tile_b, False)
        return _forward(x, w1_t, b1_2d, w2_t, b2_2d,
                        tb=tb, single_buffer_weights=False)


# --------------------------------------------------------------------------- #
# Reference + deterministic init
# --------------------------------------------------------------------------- #
def _torch_linear_init(key, out_features, in_features):
    """Mirrors nn.Linear default init: U(-k, k), k = 1/sqrt(fan_in)."""
    kw, kb = jax.random.split(key)
    bound = 1.0 / jnp.sqrt(jnp.float32(in_features))
    w = jax.random.uniform(kw, (out_features, in_features), jnp.float32, -bound, bound)
    b = jax.random.uniform(kb, (out_features,), jnp.float32, -bound, bound)
    return w, b


def _reference(x, w1, b1, w2, b2):
    """Pure-JAX reference mirroring the PyTorch module + geoopt projx."""
    h = jnp.maximum(jnp.dot(x, w1.T, precision=lax.Precision.HIGHEST) + b1, 0.0)
    y = jnp.dot(h, w2.T, precision=lax.Precision.HIGHEST) + b2
    norm = jnp.maximum(jnp.sqrt(jnp.sum(y * y, axis=-1, keepdims=True)), MIN_NORM)
    return jnp.where(norm > MAXNORM, y / norm * MAXNORM, y)


if __name__ == "__main__":
    key = jax.random.PRNGKey(0)
    k_x, k_l1, k_l2, k_x2, k_l3, k_l4 = jax.random.split(key, 6)

    # ---- small smoke test matching the module (input_dim=32, output_dim=16) ----
    BATCH, INPUT_DIM, OUTPUT_DIM = 8, 32, 16
    x = jax.random.normal(k_x, (BATCH, INPUT_DIM), jnp.float32)
    w1, b1 = _torch_linear_init(k_l1, HIDDEN, INPUT_DIM)
    w2, b2 = _torch_linear_init(k_l2, OUTPUT_DIM, HIDDEN)

    out = poincare_classifier(x, w1, b1, w2, b2)
    jax.block_until_ready(out)
    assert out.shape == (BATCH, OUTPUT_DIM)
    ref = _reference(x, w1, b1, w2, b2)
    assert bool(jnp.all(jnp.isfinite(out)))
    assert bool(jnp.allclose(out, ref, rtol=1e-4, atol=1e-5)), "mismatch vs reference"

    # ---- ragged batch: exercises the no-pad partial last block + grid > 1 ----
    B2, D_IN2, D_OUT2 = 300, 50, 10
    x2 = jax.random.normal(k_x2, (B2, D_IN2), jnp.float32)
    w1b, b1b = _torch_linear_init(k_l3, HIDDEN, D_IN2)
    w2b, b2b = _torch_linear_init(k_l4, D_OUT2, HIDDEN)

    out2 = poincare_classifier(x2, w1b, b1b, w2b, b2b, tile_b=128)
    jax.block_until_ready(out2)
    assert out2.shape == (B2, D_OUT2)
    ref2 = _reference(x2, w1b, b1b, w2b, b2b)
    assert bool(jnp.all(jnp.isfinite(out2)))
    assert bool(jnp.allclose(out2, ref2, rtol=2e-4, atol=1e-5)), "mismatch vs reference (ragged)"

    print("KERNEL_OK")
</pallas_src>

<mosaic_0001>
module attributes {stable_mosaic.version = 11 : i64} {
  func.func @poincare_classifier_kernel(%arg0: i32, %arg1: memref<8x32xf32, #tpu.memory_space<vmem>>, %arg2: memref<32x128xf32, #tpu.memory_space<vmem>>, %arg3: memref<1x128xf32, #tpu.memory_space<vmem>>, %arg4: memref<128x16xf32, #tpu.memory_space<vmem>>, %arg5: memref<1x16xf32, #tpu.memory_space<vmem>>, %arg6: memref<8x16xf32, #tpu.memory_space<vmem>>) attributes {dimension_semantics = [#tpu.dimension_semantics<parallel>], iteration_bounds = array<i64: 1>, scalar_prefetch = 0 : i64, scratch_operands = 0 : i64, tpu.core_type = #tpu.core_type<tc>, window_params = [{transform_indices = @transform_0, window_bounds = array<i64: 8, 32>}, {pipeline_mode = #tpu.pipeline_mode<synchronous>, transform_indices = @transform_1, window_bounds = array<i64: 32, 128>}, {pipeline_mode = #tpu.pipeline_mode<synchronous>, transform_indices = @transform_2, window_bounds = array<i64: 1, 128>}, {pipeline_mode = #tpu.pipeline_mode<synchronous>, transform_indices = @transform_3, window_bounds = array<i64: 128, 16>}, {pipeline_mode = #tpu.pipeline_mode<synchronous>, transform_indices = @transform_4, window_bounds = array<i64: 1, 16>}, {transform_indices = @transform_5, window_bounds = array<i64: 8, 16>}]} {
    %c0 = arith.constant 0 : index
    %c0_0 = arith.constant 0 : index
    %0 = vector.load %arg1[%c0, %c0_0] : memref<8x32xf32, #tpu.memory_space<vmem>>, vector<8x32xf32>
    %c0_1 = arith.constant 0 : index
    %c0_2 = arith.constant 0 : index
    %1 = vector.load %arg2[%c0_1, %c0_2] : memref<32x128xf32, #tpu.memory_space<vmem>>, vector<32x128xf32>
    %cst = arith.constant dense<0.000000e+00> : vector<8x128xf32>
    %2 = tpu.matmul %0, %1, %cst {dimension_numbers = #tpu.dot_dimension_numbers<[1], [0], [0], [1], [0, 0, 1, 1], [], []>} : vector<8x32xf32>, vector<32x128xf32>, vector<8x128xf32> -> vector<8x128xf32>
    %c0_3 = arith.constant 0 : index
    %c0_4 = arith.constant 0 : index
    %3 = vector.load %arg3[%c0_3, %c0_4] : memref<1x128xf32, #tpu.memory_space<vmem>>, vector<1x128xf32>
    %4 = vector.broadcast %3 : vector<1x128xf32> to vector<8x128xf32>
    %5 = arith.addf %2, %4 : vector<8x128xf32>
    %cst_5 = arith.constant 0.000000e+00 : f32
    %6 = vector.broadcast %cst_5 : f32 to vector<8x128xf32>
    %7 = arith.maximumf %5, %6 : vector<8x128xf32>
    %c0_6 = arith.constant 0 : index
    %c0_7 = arith.constant 0 : index
    %8 = vector.load %arg4[%c0_6, %c0_7] : memref<128x16xf32, #tpu.memory_space<vmem>>, vector<128x16xf32>
    %cst_8 = arith.constant dense<0.000000e+00> : vector<8x16xf32>
    %9 = tpu.matmul %7, %8, %cst_8 {dimension_numbers = #tpu.dot_dimension_numbers<[1], [0], [0], [1], [0, 0, 1, 1], [], []>} : vector<8x128xf32>, vector<128x16xf32>, vector<8x16xf32> -> vector<8x16xf32>
    %c0_9 = arith.constant 0 : index
    %c0_10 = arith.constant 0 : index
    %10 = vector.load %arg5[%c0_9, %c0_10] : memref<1x16xf32, #tpu.memory_space<vmem>>, vector<1x16xf32>
    %11 = vector.broadcast %10 : vector<1x16xf32> to vector<8x16xf32>
    %12 = arith.addf %9, %11 : vector<8x16xf32>
    %13 = arith.mulf %12, %12 : vector<8x16xf32>
    %cst_11 = arith.constant dense<0.000000e+00> : vector<8xf32>
    %14 = vector.multi_reduction <add>, %13, %cst_11 [1] : vector<8x16xf32> to vector<8xf32>
    %15 = vector.shape_cast %14 : vector<8xf32> to vector<8x1xf32>
    %cst_12 = arith.constant 1.000000e-30 : f32
    %16 = vector.broadcast %cst_12 : f32 to vector<8x1xf32>
    %17 = arith.maximumf %15, %16 : vector<8x1xf32>
    %18 = math.rsqrt %17 : vector<8x1xf32>
    %cst_13 = arith.constant 9.920160e-01 : f32
    %19 = vector.broadcast %cst_13 : f32 to vector<8x1xf32>
    %20 = arith.cmpf ogt, %15, %19 : vector<8x1xf32>
    %cst_14 = arith.constant 0.995999991 : f32
    %21 = vector.broadcast %cst_14 : f32 to vector<8x1xf32>
    %22 = arith.mulf %21, %18 : vector<8x1xf32>
    %cst_15 = arith.constant 1.000000e+00 : f32
    %23 = vector.broadcast %cst_15 : f32 to vector<8x1xf32>
    %24 = arith.select %20, %22, %23 : vector<8x1xi1>, vector<8x1xf32>
    %25 = vector.broadcast %24 : vector<8x1xf32> to vector<8x16xf32>
    %26 = arith.mulf %12, %25 : vector<8x16xf32>
    %c0_16 = arith.constant 0 : index
    %c0_17 = arith.constant 0 : index
    %27 = vector.load %arg6[%c0_16, %c0_17] : memref<8x16xf32, #tpu.memory_space<vmem>>, vector<8x16xf32>
    tpu.vector_store %arg6[%c0_16, %c0_17], %26 {strides = array<i32>} : memref<8x16xf32, #tpu.memory_space<vmem>>, vector<8x16xf32>,
    return
  }
  func.func @transform_0(%arg0: i32) -> (i32, i32) {
    %c0_i32 = arith.constant 0 : i32
    %c0_i32_0 = arith.constant 0 : i32
    return %arg0, %c0_i32 : i32, i32
  }
  func.func @transform_1(%arg0: i32) -> (i32, i32) {
    %c0_i32 = arith.constant 0 : i32
    %c0_i32_0 = arith.constant 0 : i32
    %c0_i32_1 = arith.constant 0 : i32
    return %c0_i32, %c0_i32_0 : i32, i32
  }
  func.func @transform_2(%arg0: i32) -> (i32, i32) {
    %c0_i32 = arith.constant 0 : i32
    %c0_i32_0 = arith.constant 0 : i32
    %c0_i32_1 = arith.constant 0 : i32
    return %c0_i32, %c0_i32_0 : i32, i32
  }
  func.func @transform_3(%arg0: i32) -> (i32, i32) {
    %c0_i32 = arith.constant 0 : i32
    %c0_i32_0 = arith.constant 0 : i32
    %c0_i32_1 = arith.constant 0 : i32
    return %c0_i32, %c0_i32_0 : i32, i32
  }
  func.func @transform_4(%arg0: i32) -> (i32, i32) {
    %c0_i32 = arith.constant 0 : i32
    %c0_i32_0 = arith.constant 0 : i32
    %c0_i32_1 = arith.constant 0 : i32
    return %c0_i32, %c0_i32_0 : i32, i32
  }
  func.func @transform_5(%arg0: i32) -> (i32, i32) {
    %c0_i32 = arith.constant 0 : i32
    %c0_i32_0 = arith.constant 0 : i32
    return %arg0, %c0_i32 : i32, i32
  }
}

module attributes {stable_mosaic.version = 11 : i64} {
  func.func @poincare_classifier_kernel(%arg0: i32, %arg1: memref<8x32xf32, #tpu.memory_space<vmem>>, %arg2: memref<32x128xf32, #tpu.memory_space<vmem>>, %arg3: memref<1x128xf32, #tpu.memory_space<vmem>>, %arg4: memref<128x16xf32, #tpu.memory_space<vmem>>, %arg5: memref<1x16xf32, #tpu.memory_space<vmem>>, %arg6: memref<8x16xf32, #tpu.memory_space<vmem>>) attributes {dimension_semantics = [#tpu.dimension_semantics<parallel>], iteration_bounds = array<i64: 1>, scalar_prefetch = 0 : i64, scratch_operands = 0 : i64, tpu.core_type = #tpu.core_type<tc>, window_params = [{transform_indices = @transform_0, window_bounds = array<i64: 8, 32>}, {pipeline_mode = #tpu.pipeline_mode<synchronous>, transform_indices = @transform_1, window_bounds = array<i64: 32, 128>}, {pipeline_mode = #tpu.pipeline_mode<synchronous>, transform_indices = @transform_2, window_bounds = array<i64: 1, 128>}, {pipeline_mode = #tpu.pipeline_mode<synchronous>, transform_indices = @transform_3, window_bounds = array<i64: 128, 16>}, {pipeline_mode = #tpu.pipeline_mode<synchronous>, transform_indices = @transform_4, window_bounds = array<i64: 1, 16>}, {transform_indices = @transform_5, window_bounds = array<i64: 8, 16>}]} {
    %c0 = arith.constant 0 : index
    %c0_0 = arith.constant 0 : index
    %0 = vector.load %arg1[%c0, %c0_0] : memref<8x32xf32, #tpu.memory_space<vmem>>, vector<8x32xf32>
    %c0_1 = arith.constant 0 : index
    %c0_2 = arith.constant 0 : index
    %1 = vector.load %arg2[%c0_1, %c0_2] : memref<32x128xf32, #tpu.memory_space<vmem>>, vector<32x128xf32>
    %cst = arith.constant dense<0.000000e+00> : vector<8x128xf32>
    %2 = tpu.matmul %0, %1, %cst {dimension_numbers = #tpu.dot_dimension_numbers<[1], [0], [0], [1], [0, 0, 1, 1], [], []>} : vector<8x32xf32>, vector<32x128xf32>, vector<8x128xf32> -> vector<8x128xf32>
    %c0_3 = arith.constant 0 : index
    %c0_4 = arith.constant 0 : index
    %3 = vector.load %arg3[%c0_3, %c0_4] : memref<1x128xf32, #tpu.memory_space<vmem>>, vector<1x128xf32>
    %4 = vector.broadcast %3 : vector<1x128xf32> to vector<8x128xf32>
    %5 = arith.addf %2, %4 : vector<8x128xf32>
    %cst_5 = arith.constant 0.000000e+00 : f32
    %6 = vector.broadcast %cst_5 : f32 to vector<8x128xf32>
    %7 = arith.maximumf %5, %6 : vector<8x128xf32>
    %c0_6 = arith.constant 0 : index
    %c0_7 = arith.constant 0 : index
    %8 = vector.load %arg4[%c0_6, %c0_7] : memref<128x16xf32, #tpu.memory_space<vmem>>, vector<128x16xf32>
    %cst_8 = arith.constant dense<0.000000e+00> : vector<8x16xf32>
    %9 = tpu.matmul %7, %8, %cst_8 {dimension_numbers = #tpu.dot_dimension_numbers<[1], [0], [0], [1], [0, 0, 1, 1], [], []>} : vector<8x128xf32>, vector<128x16xf32>, vector<8x16xf32> -> vector<8x16xf32>
    %c0_9 = arith.constant 0 : index
    %c0_10 = arith.constant 0 : index
    %10 = vector.load %arg5[%c0_9, %c0_10] : memref<1x16xf32, #tpu.memory_space<vmem>>, vector<1x16xf32>
    %11 = vector.broadcast %10 : vector<1x16xf32> to vector<8x16xf32>
    %12 = arith.addf %9, %11 : vector<8x16xf32>
    %13 = arith.mulf %12, %12 : vector<8x16xf32>
    %cst_11 = arith.constant dense<0.000000e+00> : vector<8xf32>
    %14 = vector.multi_reduction <add>, %13, %cst_11 [1] : vector<8x16xf32> to vector<8xf32>
    %15 = vector.shape_cast %14 : vector<8xf32> to vector<8x1xf32>
    %cst_12 = arith.constant 1.000000e-30 : f32
    %16 = vector.broadcast %cst_12 : f32 to vector<8x1xf32>
    %17 = arith.maximumf %15, %16 : vector<8x1xf32>
    %18 = math.rsqrt %17 : vector<8x1xf32>
    %cst_13 = arith.constant 9.920160e-01 : f32
    %19 = vector.broadcast %cst_13 : f32 to vector<8x1xf32>
    %20 = arith.cmpf ogt, %15, %19 : vector<8x1xf32>
    %cst_14 = arith.constant 0.995999991 : f32
    %21 = vector.broadcast %cst_14 : f32 to vector<8x1xf32>
    %22 = arith.mulf %21, %18 : vector<8x1xf32>
    %cst_15 = arith.constant 1.000000e+00 : f32
    %23 = vector.broadcast %cst_15 : f32 to vector<8x1xf32>
    %24 = arith.select %20, %22, %23 : vector<8x1xi1>, vector<8x1xf32>
    %25 = vector.broadcast %24 : vector<8x1xf32> to vector<8x16xf32>
    %26 = arith.mulf %12, %25 : vector<8x16xf32>
    %c0_16 = arith.constant 0 : index
    %c0_17 = arith.constant 0 : index
    %27 = vector.load %arg6[%c0_16, %c0_17] : memref<8x16xf32, #tpu.memory_space<vmem>>, vector<8x16xf32>
    tpu.vector_store %arg6[%c0_16, %c0_17], %26 {strides = array<i32>} : memref<8x16xf32, #tpu.memory_space<vmem>>, vector<8x16xf32>,
    return
  }
  func.func @transform_0(%arg0: i32) -> (i32, i32) {
    %c0_i32 = arith.constant 0 : i32
    %c0_i32_0 = arith.constant 0 : i32
    return %arg0, %c0_i32 : i32, i32
  }
  func.func @transform_1(%arg0: i32) -> (i32, i32) {
    %c0_i32 = arith.constant 0 : i32
    %c0_i32_0 = arith.constant 0 : i32
    %c0_i32_1 = arith.constant 0 : i32
    return %c0_i32, %c0_i32_0 : i32, i32
  }
  func.func @transform_2(%arg0: i32) -> (i32, i32) {
    %c0_i32 = arith.constant 0 : i32
    %c0_i32_0 = arith.constant 0 : i32
    %c0_i32_1 = arith.constant 0 : i32
    return %c0_i32, %c0_i32_0 : i32, i32
  }
  func.func @transform_3(%arg0: i32) -> (i32, i32) {
    %c0_i32 = arith.constant 0 : i32
    %c0_i32_0 = arith.constant 0 : i32
    %c0_i32_1 = arith.constant 0 : i32
    return %c0_i32, %c0_i32_0 : i32, i32
  }
  func.func @transform_4(%arg0: i32) -> (i32, i32) {
    %c0_i32 = arith.constant 0 : i32
    %c0_i32_0 = arith.constant 0 : i32
    %c0_i32_1 = arith.constant 0 : i32
    return %c0_i32, %c0_i32_0 : i32, i32
  }
  func.func @transform_5(%arg0: i32) -> (i32, i32) {
    %c0_i32 = arith.constant 0 : i32
    %c0_i32_0 = arith.constant 0 : i32
    return %arg0, %c0_i32 : i32, i32
  }
}

</mosaic_0001>

<bundles_post_ra>
// kernel: tpu_custom_call.1
= control target key start
LH: loop header
LB: loop body
LE: loop exit
PB: predicated region body
PF: predicated region fallthrough
CT: control target
= control target key end

     0   :  { %v358_v3 = vmov 0.0|0.0   ;;  %vm359_vm0 = vmmov 0   ;;  %v360_v6 = vmov 0.0   ;;  %s473_s0 = inlined_call_operand.vmem [shape: f32[8,32], index: 0, kind: input, shape index: {}]   ;;  %s474_s1 = inlined_call_operand.vmem [shape: f32[32,128], index: 1, kind: input, shape index: {}]   ;;  %s475_s2 = inlined_call_operand.vmem [shape: f32[1,128], index: 2, kind: input, shape index: {}]   ;;  %s476_s3 = inlined_call_operand.vmem [shape: f32[128,16], index: 3, kind: input, shape index: {}]   ;;  %s477_s4 = inlined_call_operand.vmem [shape: f32[1,16], index: 4, kind: input, shape index: {}]   ;;  %s478_s5 = inlined_call_operand.hbm [shape: f32[8,16], index: 5, kind: output, shape index: {}]  }
   0x1   :  { %v22_v0 = vld [vmem:[%s474_s1] sm:$0xff]  ;;  %v23_v1 = vld [vmem:[%s474_s1 + $0x8] sm:$0xff]  ;;  %v24_v2 = vld [vmem:[%s474_s1 + $0x10] sm:$0xff]  ;;  %298 = vmatprep.subr.bf16.mxu0 %v358_v3  ;;  %260 = vmatprep.mubr.msk.f32.mxu0 %vm359_vm0, %v360_v6 }
   0x2   :  { %v299_v4 = vpack.c.bf16 %v23_v1, %v22_v0  ;;  %v25_v5 = vld [vmem:[%s474_s1 + $0x18] sm:$0xff]  ;;  %v108_v7 = vld [vmem:[%s476_s3] sm:$0xff]  ;;  %304 = vmatprep.subr.bf16.mxu1 %v358_v3  ;;  %v109_v8 = vld [vmem:[%s476_s3 + $0x8] sm:$0xff]  ;;  %295 = vmatprep.mubr.msk.f32.mxu1 %vm359_vm0, %v360_v6 }
   0x3   :  { %v110_v9 = vld [vmem:[%s476_s3 + $0x10] sm:$0xff]  ;;  %v111_v10 = vld [vmem:[%s476_s3 + $0x18] sm:$0xff]  ;;  %v302_v11 = vpack.c.bf16 %v25_v5, %v24_v2  ;;  %v305_v12 = vpack.c.bf16 %v109_v8, %v108_v7  ;;  %v112_v14 = vld [vmem:[%s476_s3 + $0x20] sm:$0xff] }
   0x4   :  { %300 = vmatpush3.bf16.msra.mxu0 %v299_v4  ;;  %v308_v13 = vpack.c.bf16 %v111_v10, %v110_v9  ;;  %v113_v15 = vld [vmem:[%s476_s3 + $0x28] sm:$0xff] }
   0x5   :  { %301 = vmatprep.subr.bf16.mxu0 %v358_v3  ;;  %306 = vmatpush3.bf16.msra.mxu1 %v305_v12 }
   0x6   :  { %307 = vmatprep.subr.bf16.mxu1 %v358_v3 }
   0x7   :  { %10 = vsyncpa [#allocation3], 0  ;;  %v21_v16 = vld [vmem:[%s473_s0] sm:$0xff]  ;;  %vm33_vm1 = vcmask 261120   ;;  %v311_v17 = vpack.c.bf16 %v113_v15, %v112_v14  ;;  %v114_v18 = vld [vmem:[%s476_s3 + $0x30] sm:$0xff]  ;;  %vm202_vm2 = vcmask 130048  }
   0x8   :  { %303 = vmatpush3.bf16.msra.mxu0 %v302_v11  ;;  %v115_v19 = vld [vmem:[%s476_s3 + $0x38] sm:$0xff]  ;;  %v116_v21 = vld [vmem:[%s476_s3 + $0x40] sm:$0xff]  ;;  %v117_v22 = vld [vmem:[%s476_s3 + $0x48] sm:$0xff] }
   0x9   :  { %309 = vmatpush3.bf16.msra.mxu1 %v308_v13  ;;  %v314_v20 = vpack.c.bf16 %v115_v19, %v114_v18  ;;  %v317_v23 = vpack.c.bf16 %v117_v22, %v116_v21  ;;  %v118_v24 = vld [vmem:[%s476_s3 + $0x50] sm:$0xff]  ;;  %v119_v25 = vld [vmem:[%s476_s3 + $0x58] sm:$0xff]  ;;  %v120_v27 = vld [vmem:[%s476_s3 + $0x60] sm:$0xff] }
   0xa   :  { %310 = vmatprep.subr.bf16.mxu1 %v358_v3  ;;  %v320_v26 = vpack.c.bf16 %v119_v25, %v118_v24  ;;  %v121_v28 = vld [vmem:[%s476_s3 + $0x68] sm:$0xff]  ;;  %v122_v30 = vld [vmem:[%s476_s3 + $0x70] sm:$0xff]  ;;  %v123_v31 = vld [vmem:[%s476_s3 + $0x78] sm:$0xff] }
   0xb   :  { %261 = vmatmul.mubr.msk.f32.vlgmr.msra.gmra.mrb[0].mxu0 %vm33_vm1, %v21_v16  ;;  %v323_v29 = vpack.c.bf16 %v121_v28, %v120_v27  ;;  %v326_v32 = vpack.c.bf16 %v123_v31, %v122_v30  ;;  %v227_v33 = vld [vmem:[%s475_s2] ss:$0 sm:$0xff]  ;;  %s361_s2 = smov [#allocation2]  }
   0xc   :  { %v229_v38 = vld [vmem:[%s477_s4] ss:$0 sm:$0xff]  ;;  %s219_s3 = sshll.u32 %s361_s2, 4  ;;  %s220_s3 = int_to_ptr.vmem [resolvable:$true] %s219_s3 }
   0xd   :  { %312 = vmatpush3.bf16.msra.mxu1 %v311_v17  ;;  %s334_s4 = scalar_lea.vmem %s220_s3, 128  ;;  %p339_p1 = scmp.lt.s32.totalorder %s220_s3, %s220_s3 }
   0xe   :  { %313 = vmatprep.subr.bf16.mxu1 %v358_v3  ;;  %p335_p0 = scmp.ne.s32.totalorder %s220_s3, %s334_s4  ;;  %p340_p2 = scmp.lt.s32.totalorder %s334_s4, %s334_s4 }
  0x10   :  { %p341_p3 = por %p340_p2, %p339_p1 }
  0x11   :  { %315 = vmatpush3.bf16.msra.mxu1 %v314_v20 }
  0x12   :  { %316 = vmatprep.subr.bf16.mxu1 %v358_v3  ;;  %p342_p4 = pnand %p341_p3, %p335_p0 }
  0x15   :  { %318 = vmatpush3.bf16.msra.mxu1 %v317_v23 }
  0x16   :  { %319 = vmatprep.subr.bf16.mxu1 %v358_v3 }
  0x19   :  { %321 = vmatpush3.bf16.msra.mxu1 %v320_v26 }
  0x1a   :  { %322 = vmatprep.subr.bf16.mxu1 %v358_v3 }
  0x1d   :  { %324 = vmatpush3.bf16.msra.mxu1 %v323_v29 }
  0x1e   :  { %325 = vmatprep.subr.bf16.mxu1 %v358_v3 }
  0x21   :  { %327 = vmatpush3.bf16.msra.mxu1 %v326_v32 }
  0xde   :  { %v103_v34 = vpop.f32.mrb[0].mxu0 }
  0xdf   :  { %v104_v35 = vadd.f32 %v227_v33, %v103_v34  ;;  %v262_v36 = vpop.f32.mrb[1].mxu0 }
  0xe1   :  { %v107_v37 = vmax.f32 %v104_v35, 0.0 }
  0xe3   :  { %296 = vmatmul.mubr.f32.vlgmr.msra.gmra.mrb[0].mxu1 %v107_v37 }
 0x1b6   :  { %v197_v39 = vpop.f32.mrb[0].mxu1 }
 0x1b7   :  { %v198_v40 = vadd.f32 %v229_v38, %v197_v39  ;;  %v297_v41 = vpop.f32.mrb[1].mxu1 }
 0x1b9   :  { %v201_v42 = vmul.f32 %v198_v40, %v198_v40 }
 0x1bb   :  { %v203_v43 = vsel %vm202_vm2, %v201_v42, 0.0 }
 0x1bc   :  { %204 = vadd.xlane.f32.xlu0 %v203_v43 }
 0x249   :  { %v205_v44 = vpop.xlane.xlu0 %204 }
 0x24a   :  { %v206_v45 = vmax.f32 %v205_v44, 1e-30  ;;  %vm208_vm3 = vcmp.gt.f32.partialorder %v205_v44, 0.992016 }
 0x24c   :  { %332 = vrsqrt.f32 %v206_v45 }
 0x256   :  { %v333_v46 = vpop.eup %332 }
 0x257   :  { %v209_v47 = vmul.f32 0.996, %v333_v46 }
 0x259   :  { %v210_v48 = vsel %vm208_vm3, %v209_v47, 1.0 }
 0x25a   :  { %v211_v49 = vmul.f32 %v210_v48, %v198_v40 }
 0x25c   :  { %212 = vst.msk [vmem:[#allocation2] sm:$0xff] %vm202_vm2, %v211_v49 }
 0x25d   :  { %345 = shalt.err (!%p342_p4)
}
 0x25e   :  { %s346_s13 = scalar_lea.hbm %s478_s5, 128 }
 0x25f   :  { %p347_p5 = scmp.ne.s32.totalorder %s478_s5, %s346_s13  ;;  %p350_p6 = scmp.lt.u32.totalorder %s346_s13, %s478_s5 }
 0x261   :  { %p352_p7 = pnand %p350_p6, %p347_p5 }
 0x263   :  { %355 = shalt.err (!%p352_p7)
}
 0x264   :  { %222 = dma.vmem_to_hbm [thread:$0]  %s220_s3, 128, %s478_s5, [#allocation3]  }
 0x265   :  { %356 = dma.done.wait [#allocation3], 128  }
 0x266   :  { %357 = vsyncadd [#allocation3], 4294967168 }
 0x267   :  { %226 = vsyncpa [#allocation3], 1 }

// kernel: tpu_custom_call.1
= control target key start
LH: loop header
LB: loop body
LE: loop exit
PB: predicated region body
PF: predicated region fallthrough
CT: control target
= control target key end

     0   :  { %v358_v3 = vmov 0.0|0.0   ;;  %vm359_vm0 = vmmov 0   ;;  %v360_v6 = vmov 0.0   ;;  %s473_s0 = inlined_call_operand.vmem [shape: f32[8,32], index: 0, kind: input, shape index: {}]   ;;  %s474_s1 = inlined_call_operand.vmem [shape: f32[32,128], index: 1, kind: input, shape index: {}]   ;;  %s475_s2 = inlined_call_operand.vmem [shape: f32[1,128], index: 2, kind: input, shape index: {}]   ;;  %s476_s3 = inlined_call_operand.vmem [shape: f32[128,16], index: 3, kind: input, shape index: {}]   ;;  %s477_s4 = inlined_call_operand.vmem [shape: f32[1,16], index: 4, kind: input, shape index: {}]   ;;  %s478_s5 = inlined_call_operand.hbm [shape: f32[8,16], index: 5, kind: output, shape index: {}]  }
   0x1   :  { %v22_v0 = vld [vmem:[%s474_s1] sm:$0xff]  ;;  %v23_v1 = vld [vmem:[%s474_s1 + $0x8] sm:$0xff]  ;;  %v24_v2 = vld [vmem:[%s474_s1 + $0x10] sm:$0xff]  ;;  %298 = vmatprep.subr.bf16.mxu0 %v358_v3  ;;  %260 = vmatprep.mubr.msk.f32.mxu0 %vm359_vm0, %v360_v6 }
   0x2   :  { %v299_v4 = vpack.c.bf16 %v23_v1, %v22_v0  ;;  %v25_v5 = vld [vmem:[%s474_s1 + $0x18] sm:$0xff]  ;;  %v108_v7 = vld [vmem:[%s476_s3] sm:$0xff]  ;;  %304 = vmatprep.subr.bf16.mxu1 %v358_v3  ;;  %v109_v8 = vld [vmem:[%s476_s3 + $0x8] sm:$0xff]  ;;  %295 = vmatprep.mubr.msk.f32.mxu1 %vm359_vm0, %v360_v6 }
   0x3   :  { %v110_v9 = vld [vmem:[%s476_s3 + $0x10] sm:$0xff]  ;;  %v111_v10 = vld [vmem:[%s476_s3 + $0x18] sm:$0xff]  ;;  %v302_v11 = vpack.c.bf16 %v25_v5, %v24_v2  ;;  %v305_v12 = vpack.c.bf16 %v109_v8, %v108_v7  ;;  %v112_v14 = vld [vmem:[%s476_s3 + $0x20] sm:$0xff] }
   0x4   :  { %300 = vmatpush3.bf16.msra.mxu0 %v299_v4  ;;  %v308_v13 = vpack.c.bf16 %v111_v10, %v110_v9  ;;  %v113_v15 = vld [vmem:[%s476_s3 + $0x28] sm:$0xff] }
   0x5   :  { %301 = vmatprep.subr.bf16.mxu0 %v358_v3  ;;  %306 = vmatpush3.bf16.msra.mxu1 %v305_v12 }
   0x6   :  { %307 = vmatprep.subr.bf16.mxu1 %v358_v3 }
   0x7   :  { %10 = vsyncpa [#allocation3], 0  ;;  %v21_v16 = vld [vmem:[%s473_s0] sm:$0xff]  ;;  %vm33_vm1 = vcmask 261120   ;;  %v311_v17 = vpack.c.bf16 %v113_v15, %v112_v14  ;;  %v114_v18 = vld [vmem:[%s476_s3 + $0x30] sm:$0xff]  ;;  %vm202_vm2 = vcmask 130048  }
   0x8   :  { %303 = vmatpush3.bf16.msra.mxu0 %v302_v11  ;;  %v115_v19 = vld [vmem:[%s476_s3 + $0x38] sm:$0xff]  ;;  %v116_v21 = vld [vmem:[%s476_s3 + $0x40] sm:$0xff]  ;;  %v117_v22 = vld [vmem:[%s476_s3 + $0x48] sm:$0xff] }
   0x9   :  { %309 = vmatpush3.bf16.msra.mxu1 %v308_v13  ;;  %v314_v20 = vpack.c.bf16 %v115_v19, %v114_v18  ;;  %v317_v23 = vpack.c.bf16 %v117_v22, %v116_v21  ;;  %v118_v24 = vld [vmem:[%s476_s3 + $0x50] sm:$0xff]  ;;  %v119_v25 = vld [vmem:[%s476_s3 + $0x58] sm:$0xff]  ;;  %v120_v27 = vld [vmem:[%s476_s3 + $0x60] sm:$0xff] }
   0xa   :  { %310 = vmatprep.subr.bf16.mxu1 %v358_v3  ;;  %v320_v26 = vpack.c.bf16 %v119_v25, %v118_v24  ;;  %v121_v28 = vld [vmem:[%s476_s3 + $0x68] sm:$0xff]  ;;  %v122_v30 = vld [vmem:[%s476_s3 + $0x70] sm:$0xff]  ;;  %v123_v31 = vld [vmem:[%s476_s3 + $0x78] sm:$0xff] }
   0xb   :  { %261 = vmatmul.mubr.msk.f32.vlgmr.msra.gmra.mrb[0].mxu0 %vm33_vm1, %v21_v16  ;;  %v323_v29 = vpack.c.bf16 %v121_v28, %v120_v27  ;;  %v326_v32 = vpack.c.bf16 %v123_v31, %v122_v30  ;;  %v227_v33 = vld [vmem:[%s475_s2] ss:$0 sm:$0xff]  ;;  %s361_s2 = smov [#allocation2]  }
   0xc   :  { %v229_v38 = vld [vmem:[%s477_s4] ss:$0 sm:$0xff]  ;;  %s219_s3 = sshll.u32 %s361_s2, 4  ;;  %s220_s3 = int_to_ptr.vmem [resolvable:$true] %s219_s3 }
   0xd   :  { %312 = vmatpush3.bf16.msra.mxu1 %v311_v17  ;;  %s334_s4 = scalar_lea.vmem %s220_s3, 128  ;;  %p339_p1 = scmp.lt.s32.totalorder %s220_s3, %s220_s3 }
   0xe   :  { %313 = vmatprep.subr.bf16.mxu1 %v358_v3  ;;  %p335_p0 = scmp.ne.s32.totalorder %s220_s3, %s334_s4  ;;  %p340_p2 = scmp.lt.s32.totalorder %s334_s4, %s334_s4 }
  0x10   :  { %p341_p3 = por %p340_p2, %p339_p1 }
  0x11   :  { %315 = vmatpush3.bf16.msra.mxu1 %v314_v20 }
  0x12   :  { %316 = vmatprep.subr.bf16.mxu1 %v358_v3  ;;  %p342_p4 = pnand %p341_p3, %p335_p0 }
  0x15   :  { %318 = vmatpush3.bf16.msra.mxu1 %v317_v23 }
  0x16   :  { %319 = vmatprep.subr.bf16.mxu1 %v358_v3 }
  0x19   :  { %321 = vmatpush3.bf16.msra.mxu1 %v320_v26 }
  0x1a   :  { %322 = vmatprep.subr.bf16.mxu1 %v358_v3 }
  0x1d   :  { %324 = vmatpush3.bf16.msra.mxu1 %v323_v29 }
  0x1e   :  { %325 = vmatprep.subr.bf16.mxu1 %v358_v3 }
  0x21   :  { %327 = vmatpush3.bf16.msra.mxu1 %v326_v32 }
  0xde   :  { %v103_v34 = vpop.f32.mrb[0].mxu0 }
  0xdf   :  { %v104_v35 = vadd.f32 %v227_v33, %v103_v34  ;;  %v262_v36 = vpop.f32.mrb[1].mxu0 }
  0xe1   :  { %v107_v37 = vmax.f32 %v104_v35, 0.0 }
  0xe3   :  { %296 = vmatmul.mubr.f32.vlgmr.msra.gmra.mrb[0].mxu1 %v107_v37 }
 0x1b6   :  { %v197_v39 = vpop.f32.mrb[0].mxu1 }
 0x1b7   :  { %v198_v40 = vadd.f32 %v229_v38, %v197_v39  ;;  %v297_v41 = vpop.f32.mrb[1].mxu1 }
 0x1b9   :  { %v201_v42 = vmul.f32 %v198_v40, %v198_v40 }
 0x1bb   :  { %v203_v43 = vsel %vm202_vm2, %v201_v42, 0.0 }
 0x1bc   :  { %204 = vadd.xlane.f32.xlu0 %v203_v43 }
 0x249   :  { %v205_v44 = vpop.xlane.xlu0 %204 }
 0x24a   :  { %v206_v45 = vmax.f32 %v205_v44, 1e-30  ;;  %vm208_vm3 = vcmp.gt.f32.partialorder %v205_v44, 0.992016 }
 0x24c   :  { %332 = vrsqrt.f32 %v206_v45 }
 0x256   :  { %v333_v46 = vpop.eup %332 }
 0x257   :  { %v209_v47 = vmul.f32 0.996, %v333_v46 }
 0x259   :  { %v210_v48 = vsel %vm208_vm3, %v209_v47, 1.0 }
 0x25a   :  { %v211_v49 = vmul.f32 %v210_v48, %v198_v40 }
 0x25c   :  { %212 = vst.msk [vmem:[#allocation2] sm:$0xff] %vm202_vm2, %v211_v49 }
 0x25d   :  { %345 = shalt.err (!%p342_p4)
}
 0x25e   :  { %s346_s13 = scalar_lea.hbm %s478_s5, 128 }
 0x25f   :  { %p347_p5 = scmp.ne.s32.totalorder %s478_s5, %s346_s13  ;;  %p350_p6 = scmp.lt.u32.totalorder %s346_s13, %s478_s5 }
 0x261   :  { %p352_p7 = pnand %p350_p6, %p347_p5 }
 0x263   :  { %355 = shalt.err (!%p352_p7)
}
 0x264   :  { %222 = dma.vmem_to_hbm [thread:$0]  %s220_s3, 128, %s478_s5, [#allocation3]  }
 0x265   :  { %356 = dma.done.wait [#allocation3], 128  }
 0x266   :  { %357 = vsyncadd [#allocation3], 4294967168 }
 0x267   :  { %226 = vsyncpa [#allocation3], 1 }

</bundles_post_ra>
